<compile_context>
chip_gen: v7x
topology: tpu7x:2x2x1
jax: 0.10.0
libtpu: 0.0.40
codegen_flags: <defaults>
</compile_context>

<pallas_src>
from functools import partial

import jax
import jax.numpy as jnp
from jax.experimental import pallas as pl
from jax.experimental.pallas import tpu as pltpu


def _vmem_limit_bytes():
    """~2/3 of physical VMEM (leaves headroom for compiler scratch, esp. v7x)."""
    try:
        cap = int(pltpu.get_tpu_info().vmem_capacity_bytes)
    except Exception:
        cap = 64 * 1024 * 1024
    return max(32 * 1024 * 1024, (cap * 2) // 3)


def _pick_head_block(heads, n, d, budget_bytes=8 << 20):
    """Largest divisor of `heads` whose per-step f32 temporaries fit the budget."""
    per_head = 2 * n * n * 4 + 4 * n * d * 4      # scores+exp (N,N) plus (N,D) buffers
    cap = max(1, budget_bytes // max(per_head, 1))
    hb = 1
    for cand in range(1, heads + 1):
        if heads % cand == 0 and cand <= cap:
            hb = cand
    return hb


# ----------------------------------------------------------------------------
# Fused kernel: per grid step = (one batch element) x (one block of heads).
# The head-block axis is a reduction into a resident f32 accumulator that holds
# the already-projected output rows (N, dim_out).
# ----------------------------------------------------------------------------
def _make_fused_attn_kernel(scale, heads_per_block):
    def kernel(x_ref, wqkv_ref, mask_ref, wout_ref, bias_ref, o_ref, acc_ref):
        hb_idx = pl.program_id(1)

        @pl.when(hb_idx == 0)
        def _():
            acc_ref[...] = jnp.zeros_like(acc_ref)

        x = x_ref[0]                                              # (N, dim)
        # Post-softmax multiplicative mask, folded into the value operand.
        keep = (1.0 - mask_ref[0].astype(jnp.float32)).astype(x.dtype)   # (N, 1)
        scale_c = jnp.asarray(scale, dtype=x.dtype)

        for h in range(heads_per_block):                          # static unroll
            # Shared q/k/v projection for this head: w = x @ Wqkv_h  -> (N, D)
            w = jnp.dot(x, wqkv_ref[h],
                        preferred_element_type=jnp.float32).astype(x.dtype)

            # scores = (w*scale) @ w^T  — scale folded into LHS (N*D mul, not N^2);
            # contraction on last dims, no explicit transpose.
            s = jax.lax.dot_general(
                w * scale_c, w, (((1,), (1,)), ((), ())),
                preferred_element_type=jnp.float32)               # (N, N) f32
            s = s - jnp.max(s, axis=-1, keepdims=True)
            p = jnp.exp(s)
            denom = jnp.sum(p, axis=-1, keepdims=True)            # (N, 1) f32

            # attn*(1-mask) @ w  ==  p @ (w*(1-mask)) / denom :
            # mask applied ONLY to the value copy of w, normalization deferred.
            pv = jnp.dot(p.astype(x.dtype), w * keep,
                         preferred_element_type=jnp.float32)      # (N, D) f32
            pv = pv * pl.reciprocal(denom, approx=False)

            # Head-concat + to_out projection fused:  y += pv_h @ Wout_h
            acc_ref[...] += jnp.dot(pv.astype(x.dtype), wout_ref[h],
                                    preferred_element_type=jnp.float32)

        @pl.when(hb_idx == pl.num_programs(1) - 1)
        def _():
            o_ref[0] = (acc_ref[...]
                        + bias_ref[...].astype(jnp.float32)).astype(o_ref.dtype)

    return kernel


# ----------------------------------------------------------------------------
# Full module forward.
# ----------------------------------------------------------------------------
@partial(jax.jit, static_argnames=("heads", "compute_dtype"))
def attention_forward(x, mask, qkv_weight, out_weight, out_bias, *,
                      heads, compute_dtype=None):
    """x: (B, N, dim); mask: (B, N) float (1 = masked) or None;
    qkv_weight: (inner, dim); out_weight: (dim_out, inner) or None (Identity);
    out_bias: (dim_out,) or None."""
    B, N, dim = x.shape
    inner = qkv_weight.shape[0]
    assert inner % heads == 0
    D = inner // heads
    scale = float(D) ** -0.5
    cd = compute_dtype if compute_dtype is not None else x.dtype

    if mask is None:
        mask = jnp.zeros((B, N), jnp.float32)
    mask3 = mask.astype(jnp.float32).reshape(B, N, 1)

    # Per-head qkv weight:  Wqkv^T columns for head h -> (heads, dim, D).
    wqkv3 = qkv_weight.T.reshape(dim, heads, D).transpose(1, 0, 2).astype(cd)

    # Per-head output-projection weight:  Wout^T rows for head h -> (heads, D, dim_out).
    if out_weight is None:
        # project_out == False -> Identity; identity weight keeps the fused form.
        dim_out = inner
        wout3 = jnp.eye(inner, dtype=cd).reshape(heads, D, inner)
        bias2 = jnp.zeros((1, inner), jnp.float32)
    else:
        dim_out = out_weight.shape[0]
        wout3 = out_weight.T.reshape(heads, D, dim_out).astype(cd)
        ob = out_bias if out_bias is not None else jnp.zeros((dim_out,), jnp.float32)
        bias2 = ob.reshape(1, dim_out).astype(jnp.float32)

    hb = _pick_head_block(heads, N, D)
    grid = (B, heads // hb)

    # TODO(synk): nn.Dropout (p=0.0 here) is an identity in forward; stochastic
    # dropout is not implemented.
    return pl.pallas_call(
        _make_fused_attn_kernel(scale, hb),
        out_shape=jax.ShapeDtypeStruct((B, N, dim_out), x.dtype),
        grid_spec=pltpu.PrefetchScalarGridSpec(
            num_scalar_prefetch=0,
            grid=grid,
            in_specs=[
                pl.BlockSpec((1, N, dim), lambda b, k: (b, 0, 0)),        # x rows
                pl.BlockSpec((hb, dim, D), lambda b, k: (k, 0, 0)),       # qkv weights
                pl.BlockSpec((1, N, 1), lambda b, k: (b, 0, 0)),          # mask
                pl.BlockSpec((hb, D, dim_out), lambda b, k: (k, 0, 0)),   # out weights
                pl.BlockSpec((1, dim_out), lambda b, k: (0, 0)),          # out bias
            ],
            out_specs=pl.BlockSpec((1, N, dim_out), lambda b, k: (b, 0, 0)),
            scratch_shapes=[pltpu.VMEM((N, dim_out), jnp.float32)],
        ),
        compiler_params=pltpu.CompilerParams(
            dimension_semantics=("parallel", "arbitrary"),
            vmem_limit_bytes=_vmem_limit_bytes(),
        ),
    )(x.astype(cd), wqkv3, mask3, wout3, bias2)


# ----------------------------------------------------------------------------
# Pure-JAX reference.
# ----------------------------------------------------------------------------
def _reference(x, mask, qkv_w, out_w, out_b, heads):
    hp = jax.lax.Precision.HIGHEST
    B, N, dim = x.shape
    inner = qkv_w.shape[0]
    d = inner // heads
    w = jnp.einsum("bnk,ik->bni", x, qkv_w, precision=hp)
    w = w.reshape(B, N, heads, d).transpose(0, 2, 1, 3)
    dots = jnp.einsum("bhnd,bhmd->bhnm", w, w, precision=hp) * (d ** -0.5)
    attn = jax.nn.softmax(dots, axis=-1)
    attn = attn * (1.0 - mask[:, None, None, :].astype(jnp.float32))
    out = jnp.einsum("bhnm,bhmd->bhnd", attn, w, precision=hp)
    out = out.transpose(0, 2, 1, 3).reshape(B, N, inner)
    return jnp.einsum("bni,oi->bno", out, out_w, precision=hp) + out_b


if __name__ == "__main__":
    key = jax.random.PRNGKey(0)
    kx, kq, ko, kb, km = jax.random.split(key, 5)

    batch, seq, dim = 2, 8, 32
    heads, dim_head = 2, 16
    inner = heads * dim_head

    x = jax.random.normal(kx, (batch, seq, dim), jnp.float32)
    # nn.Linear default init: U(-1/sqrt(fan_in), 1/sqrt(fan_in))
    bq = 1.0 / (dim ** 0.5)
    qkv_w = jax.random.uniform(kq, (inner, dim), jnp.float32, -bq, bq)
    bo = 1.0 / (inner ** 0.5)
    out_w = jax.random.uniform(ko, (dim, inner), jnp.float32, -bo, bo)
    out_b = jax.random.uniform(kb, (dim,), jnp.float32, -bo, bo)
    mask = (jax.random.uniform(km, (batch, seq)) < 0.25).astype(jnp.float32)

    out = attention_forward(x, mask, qkv_w, out_w, out_b, heads=heads)
    out = jax.block_until_ready(out)

    ref = _reference(x, mask, qkv_w, out_w, out_b, heads)
    assert out.shape == (batch, seq, dim)
    assert jnp.allclose(out, ref, atol=1e-4, rtol=1e-4), "mismatch vs reference"

    print("KERNEL_OK")
</pallas_src>

<mosaic_0001>
module attributes {stable_mosaic.version = 11 : i64} {
  func.func @kernel(%arg0: i32, %arg1: i32, %arg2: memref<1x8x32xf32, #tpu.memory_space<vmem>>, %arg3: memref<2x32x16xf32, #tpu.memory_space<vmem>>, %arg4: memref<1x8x1xf32, #tpu.memory_space<vmem>>, %arg5: memref<2x16x32xf32, #tpu.memory_space<vmem>>, %arg6: memref<1x32xf32, #tpu.memory_space<vmem>>, %arg7: memref<1x8x32xf32, #tpu.memory_space<vmem>>, %arg8: memref<8x32xf32, #tpu.memory_space<vmem>>) attributes {dimension_semantics = [#tpu.dimension_semantics<parallel>, #tpu.dimension_semantics<arbitrary>], iteration_bounds = array<i64: 2, 1>, scalar_prefetch = 0 : i64, scratch_operands = 1 : i64, tpu.core_type = #tpu.core_type<tc>, window_params = [{transform_indices = @transform_0, window_bounds = array<i64: 1, 8, 32>}, {transform_indices = @transform_1, window_bounds = array<i64: 2, 32, 16>}, {transform_indices = @transform_2, window_bounds = array<i64: 1, 8, 1>}, {transform_indices = @transform_3, window_bounds = array<i64: 2, 16, 32>}, {pipeline_mode = #tpu.pipeline_mode<synchronous>, transform_indices = @transform_4, window_bounds = array<i64: 1, 32>}, {transform_indices = @transform_5, window_bounds = array<i64: 1, 8, 32>}]} {
    %c0_i32 = arith.constant 0 : i32
    %0 = arith.cmpi eq, %arg1, %c0_i32 : i32
    %1 = arith.extui %0 : i1 to i32
    %c0_i32_0 = arith.constant 0 : i32
    %2 = arith.cmpi ne, %1, %c0_i32_0 : i32
    scf.if %2 {
      %cst_41 = arith.constant 0.000000e+00 : f32
      %62 = vector.broadcast %cst_41 : f32 to vector<8x32xf32>
      %c0_42 = arith.constant 0 : index
      %c0_43 = arith.constant 0 : index
      %63 = vector.load %arg8[%c0_42, %c0_43] : memref<8x32xf32, #tpu.memory_space<vmem>>, vector<8x32xf32>
      tpu.vector_store %arg8[%c0_42, %c0_43], %62 {strides = array<i32>} : memref<8x32xf32, #tpu.memory_space<vmem>>, vector<8x32xf32>,
    } else {
    }
    %c0 = arith.constant 0 : index
    %c0_1 = arith.constant 0 : index
    %c0_2 = arith.constant 0 : index
    %3 = vector.load %arg2[%c0, %c0_1, %c0_2] : memref<1x8x32xf32, #tpu.memory_space<vmem>>, vector<1x8x32xf32>
    %4 = vector.shape_cast %3 : vector<1x8x32xf32> to vector<8x32xf32>
    %c0_3 = arith.constant 0 : index
    %c0_4 = arith.constant 0 : index
    %c0_5 = arith.constant 0 : index
    %5 = vector.load %arg4[%c0_3, %c0_4, %c0_5] : memref<1x8x1xf32, #tpu.memory_space<vmem>>, vector<1x8x1xf32>
    %6 = vector.shape_cast %5 : vector<1x8x1xf32> to vector<8x1xf32>
    %cst = arith.constant 1.000000e+00 : f32
    %7 = vector.broadcast %cst : f32 to vector<8x1xf32>
    %8 = arith.subf %7, %6 : vector<8x1xf32>
    %c0_6 = arith.constant 0 : index
    %c0_7 = arith.constant 0 : index
    %c0_8 = arith.constant 0 : index
    %9 = vector.load %arg3[%c0_6, %c0_7, %c0_8] : memref<2x32x16xf32, #tpu.memory_space<vmem>>, vector<1x32x16xf32>
    %10 = vector.shape_cast %9 : vector<1x32x16xf32> to vector<32x16xf32>
    %cst_9 = arith.constant dense<0.000000e+00> : vector<8x16xf32>
    %11 = tpu.matmul %4, %10, %cst_9 {dimension_numbers = #tpu.dot_dimension_numbers<[1], [0], [0], [1], [0, 0, 1, 1], [], []>} : vector<8x32xf32>, vector<32x16xf32>, vector<8x16xf32> -> vector<8x16xf32>
    %cst_10 = arith.constant 2.500000e-01 : f32
    %12 = vector.broadcast %cst_10 : f32 to vector<8x16xf32>
    %13 = arith.mulf %11, %12 : vector<8x16xf32>
    %cst_11 = arith.constant dense<0.000000e+00> : vector<8x8xf32>
    %14 = tpu.matmul %13, %11, %cst_11 {dimension_numbers = #tpu.dot_dimension_numbers<[1], [1], [0], [0], [0, 0, 1, 0], [], []>} : vector<8x16xf32>, vector<8x16xf32>, vector<8x8xf32> -> vector<8x8xf32>
    %cst_12 = arith.constant dense<0xFF800000> : vector<8xf32>
    %15 = vector.multi_reduction <maximumf>, %14, %cst_12 [1] : vector<8x8xf32> to vector<8xf32>
    %16 = vector.shape_cast %15 : vector<8xf32> to vector<8x1xf32>
    %17 = vector.broadcast %16 : vector<8x1xf32> to vector<8x8xf32>
    %18 = arith.subf %14, %17 : vector<8x8xf32>
    %19 = math.exp %18 : vector<8x8xf32>
    %cst_13 = arith.constant dense<0.000000e+00> : vector<8xf32>
    %20 = vector.multi_reduction <add>, %19, %cst_13 [1] : vector<8x8xf32> to vector<8xf32>
    %21 = vector.shape_cast %20 : vector<8xf32> to vector<8x1xf32>
    %22 = vector.broadcast %8 : vector<8x1xf32> to vector<8x16xf32>
    %23 = arith.mulf %11, %22 : vector<8x16xf32>
    %cst_14 = arith.constant dense<0.000000e+00> : vector<8x16xf32>
    %24 = tpu.matmul %19, %23, %cst_14 {dimension_numbers = #tpu.dot_dimension_numbers<[1], [0], [0], [1], [0, 0, 1, 1], [], []>} : vector<8x8xf32>, vector<8x16xf32>, vector<8x16xf32> -> vector<8x16xf32>
    %25 = tpu.reciprocal %21 : vector<8x1xf32> -> vector<8x1xf32>
    %26 = vector.broadcast %25 : vector<8x1xf32> to vector<8x16xf32>
    %27 = arith.mulf %24, %26 : vector<8x16xf32>
    %c0_15 = arith.constant 0 : index
    %c0_16 = arith.constant 0 : index
    %28 = vector.load %arg8[%c0_15, %c0_16] : memref<8x32xf32, #tpu.memory_space<vmem>>, vector<8x32xf32>
    %c0_17 = arith.constant 0 : index
    %c0_18 = arith.constant 0 : index
    %c0_19 = arith.constant 0 : index
    %29 = vector.load %arg5[%c0_17, %c0_18, %c0_19] : memref<2x16x32xf32, #tpu.memory_space<vmem>>, vector<1x16x32xf32>
    %30 = vector.shape_cast %29 : vector<1x16x32xf32> to vector<16x32xf32>
    %cst_20 = arith.constant dense<0.000000e+00> : vector<8x32xf32>
    %31 = tpu.matmul %27, %30, %cst_20 {dimension_numbers = #tpu.dot_dimension_numbers<[1], [0], [0], [1], [0, 0, 1, 1], [], []>} : vector<8x16xf32>, vector<16x32xf32>, vector<8x32xf32> -> vector<8x32xf32>
    %32 = arith.addf %28, %31 : vector<8x32xf32>
    %c0_21 = arith.constant 0 : index
    %c0_22 = arith.constant 0 : index
    %33 = vector.load %arg8[%c0_21, %c0_22] : memref<8x32xf32, #tpu.memory_space<vmem>>, vector<8x32xf32>
    tpu.vector_store %arg8[%c0_21, %c0_22], %32 {strides = array<i32>} : memref<8x32xf32, #tpu.memory_space<vmem>>, vector<8x32xf32>,
    %c1 = arith.constant 1 : index
    %c0_23 = arith.constant 0 : index
    %c0_24 = arith.constant 0 : index
    %34 = vector.load %arg3[%c1, %c0_23, %c0_24] : memref<2x32x16xf32, #tpu.memory_space<vmem>>, vector<1x32x16xf32>
    %35 = vector.shape_cast %34 : vector<1x32x16xf32> to vector<32x16xf32>
    %cst_25 = arith.constant dense<0.000000e+00> : vector<8x16xf32>
    %36 = tpu.matmul %4, %35, %cst_25 {dimension_numbers = #tpu.dot_dimension_numbers<[1], [0], [0], [1], [0, 0, 1, 1], [], []>} : vector<8x32xf32>, vector<32x16xf32>, vector<8x16xf32> -> vector<8x16xf32>
    %cst_26 = arith.constant 2.500000e-01 : f32
    %37 = vector.broadcast %cst_26 : f32 to vector<8x16xf32>
    %38 = arith.mulf %36, %37 : vector<8x16xf32>
    %cst_27 = arith.constant dense<0.000000e+00> : vector<8x8xf32>
    %39 = tpu.matmul %38, %36, %cst_27 {dimension_numbers = #tpu.dot_dimension_numbers<[1], [1], [0], [0], [0, 0, 1, 0], [], []>} : vector<8x16xf32>, vector<8x16xf32>, vector<8x8xf32> -> vector<8x8xf32>
    %cst_28 = arith.constant dense<0xFF800000> : vector<8xf32>
    %40 = vector.multi_reduction <maximumf>, %39, %cst_28 [1] : vector<8x8xf32> to vector<8xf32>
    %41 = vector.shape_cast %40 : vector<8xf32> to vector<8x1xf32>
    %42 = vector.broadcast %41 : vector<8x1xf32> to vector<8x8xf32>
    %43 = arith.subf %39, %42 : vector<8x8xf32>
    %44 = math.exp %43 : vector<8x8xf32>
    %cst_29 = arith.constant dense<0.000000e+00> : vector<8xf32>
    %45 = vector.multi_reduction <add>, %44, %cst_29 [1] : vector<8x8xf32> to vector<8xf32>
    %46 = vector.shape_cast %45 : vector<8xf32> to vector<8x1xf32>
    %47 = vector.broadcast %8 : vector<8x1xf32> to vector<8x16xf32>
    %48 = arith.mulf %36, %47 : vector<8x16xf32>
    %cst_30 = arith.constant dense<0.000000e+00> : vector<8x16xf32>
    %49 = tpu.matmul %44, %48, %cst_30 {dimension_numbers = #tpu.dot_dimension_numbers<[1], [0], [0], [1], [0, 0, 1, 1], [], []>} : vector<8x8xf32>, vector<8x16xf32>, vector<8x16xf32> -> vector<8x16xf32>
    %50 = tpu.reciprocal %46 : vector<8x1xf32> -> vector<8x1xf32>
    %51 = vector.broadcast %50 : vector<8x1xf32> to vector<8x16xf32>
    %52 = arith.mulf %49, %51 : vector<8x16xf32>
    %c0_31 = arith.constant 0 : index
    %c0_32 = arith.constant 0 : index
    %53 = vector.load %arg8[%c0_31, %c0_32] : memref<8x32xf32, #tpu.memory_space<vmem>>, vector<8x32xf32>
    %c1_33 = arith.constant 1 : index
    %c0_34 = arith.constant 0 : index
    %c0_35 = arith.constant 0 : index
    %54 = vector.load %arg5[%c1_33, %c0_34, %c0_35] : memref<2x16x32xf32, #tpu.memory_space<vmem>>, vector<1x16x32xf32>
    %55 = vector.shape_cast %54 : vector<1x16x32xf32> to vector<16x32xf32>
    %cst_36 = arith.constant dense<0.000000e+00> : vector<8x32xf32>
    %56 = tpu.matmul %52, %55, %cst_36 {dimension_numbers = #tpu.dot_dimension_numbers<[1], [0], [0], [1], [0, 0, 1, 1], [], []>} : vector<8x16xf32>, vector<16x32xf32>, vector<8x32xf32> -> vector<8x32xf32>
    %57 = arith.addf %53, %56 : vector<8x32xf32>
    %c0_37 = arith.constant 0 : index
    %c0_38 = arith.constant 0 : index
    %58 = vector.load %arg8[%c0_37, %c0_38] : memref<8x32xf32, #tpu.memory_space<vmem>>, vector<8x32xf32>
    tpu.vector_store %arg8[%c0_37, %c0_38], %57 {strides = array<i32>} : memref<8x32xf32, #tpu.memory_space<vmem>>, vector<8x32xf32>,
    %c0_i32_39 = arith.constant 0 : i32
    %59 = arith.cmpi eq, %arg1, %c0_i32_39 : i32
    %60 = arith.extui %59 : i1 to i32
    %c0_i32_40 = arith.constant 0 : i32
    %61 = arith.cmpi ne, %60, %c0_i32_40 : i32
    scf.if %61 {
      %c0_41 = arith.constant 0 : index
      %c0_42 = arith.constant 0 : index
      %62 = vector.load %arg8[%c0_41, %c0_42] : memref<8x32xf32, #tpu.memory_space<vmem>>, vector<8x32xf32>
      %c0_43 = arith.constant 0 : index
      %c0_44 = arith.constant 0 : index
      %63 = vector.load %arg6[%c0_43, %c0_44] : memref<1x32xf32, #tpu.memory_space<vmem>>, vector<1x32xf32>
      %64 = vector.broadcast %63 : vector<1x32xf32> to vector<8x32xf32>
      %65 = arith.addf %62, %64 : vector<8x32xf32>
      %c0_45 = arith.constant 0 : index
      %c0_46 = arith.constant 0 : index
      %c0_47 = arith.constant 0 : index
      %66 = vector.load %arg7[%c0_45, %c0_46, %c0_47] : memref<1x8x32xf32, #tpu.memory_space<vmem>>, vector<1x8x32xf32>
      %67 = vector.shape_cast %66 : vector<1x8x32xf32> to vector<8x32xf32>
      %68 = vector.shape_cast %65 : vector<8x32xf32> to vector<1x8x32xf32>
      tpu.vector_store %arg7[%c0_45, %c0_46, %c0_47], %68 {strides = array<i32>} : memref<1x8x32xf32, #tpu.memory_space<vmem>>, vector<1x8x32xf32>,
    } else {
    }
    return
  }
  func.func @transform_0(%arg0: i32, %arg1: i32) -> (i32, i32, i32) {
    %c0_i32 = arith.constant 0 : i32
    %c0_i32_0 = arith.constant 0 : i32
    %c0_i32_1 = arith.constant 0 : i32
    return %arg0, %c0_i32, %c0_i32_0 : i32, i32, i32
  }
  func.func @transform_1(%arg0: i32, %arg1: i32) -> (i32, i32, i32) {
    %c0_i32 = arith.constant 0 : i32
    %c0_i32_0 = arith.constant 0 : i32
    %c0_i32_1 = arith.constant 0 : i32
    return %arg1, %c0_i32, %c0_i32_0 : i32, i32, i32
  }
  func.func @transform_2(%arg0: i32, %arg1: i32) -> (i32, i32, i32) {
    %c0_i32 = arith.constant 0 : i32
    %c0_i32_0 = arith.constant 0 : i32
    %c0_i32_1 = arith.constant 0 : i32
    return %arg0, %c0_i32, %c0_i32_0 : i32, i32, i32
  }
  func.func @transform_3(%arg0: i32, %arg1: i32) -> (i32, i32, i32) {
    %c0_i32 = arith.constant 0 : i32
    %c0_i32_0 = arith.constant 0 : i32
    %c0_i32_1 = arith.constant 0 : i32
    return %arg1, %c0_i32, %c0_i32_0 : i32, i32, i32
  }
  func.func @transform_4(%arg0: i32, %arg1: i32) -> (i32, i32) {
    %c0_i32 = arith.constant 0 : i32
    %c0_i32_0 = arith.constant 0 : i32
    %c0_i32_1 = arith.constant 0 : i32
    return %c0_i32, %c0_i32_0 : i32, i32
  }
  func.func @transform_5(%arg0: i32, %arg1: i32) -> (i32, i32, i32) {
    %c0_i32 = arith.constant 0 : i32
    %c0_i32_0 = arith.constant 0 : i32
    %c0_i32_1 = arith.constant 0 : i32
    return %arg0, %c0_i32, %c0_i32_0 : i32, i32, i32
  }
}

</mosaic_0001>

<bundles_post_ra>
// kernel: attention_forward.1
= control target key start
LH: loop header
LB: loop body
LE: loop exit
PB: predicated region body
PF: predicated region fallthrough
CT: control target
= control target key end

     0   :  { %10 = vsyncpa [#allocation4], 0  ;;  %s1596_s0 = inlined_call_operand.vmem [shape: f32[2,8,32], index: 0, kind: input, shape index: {}]   ;;  %s1597_s1 = inlined_call_operand.vmem [shape: f32[2,32,16], index: 1, kind: input, shape index: {}]   ;;  %s1598_s2 = inlined_call_operand.vmem [shape: f32[2,8,1], index: 2, kind: input, shape index: {}]   ;;  %s1599_s3 = inlined_call_operand.vmem [shape: f32[2,16,32], index: 3, kind: input, shape index: {}]   ;;  %s1600_s4 = inlined_call_operand.vmem [shape: f32[1,32], index: 4, kind: input, shape index: {}]   ;;  %s1601_s5 = inlined_call_operand.hbm [shape: f32[2,8,32], index: 5, kind: output, shape index: {}]  }
   0x1   :  { %12 = vsyncpa [#allocation4 + $0x1], 0  ;;  %s1397_s18 = smov 0   ;;  %s1399_s19 = smov 0  }
   0x2   :  { %s1401_s20 = smov 0   ;;  %s1403_s21 = smov 0  }
   0x3   :  { %s1405_s22 = smov 0   ;;  %s1407_s23 = smov 0  }
   0x4 LB: > { %s1085_s24 = sadd.s32 4294967295, %s1360_s23   ;;  %s1086_s25 = sadd.s32 4294967294, %s1360_s23   ;;  %s1360_s23 = sphi %s1407_s23, %s18_s23   ;;  %s1356_s22 = sphi %s1405_s22, %s1608_s22   ;;  %s1352_s21 = sphi %s1403_s21, %s1607_s21   ;;  %s1348_s20 = sphi %s1401_s20, %s1606_s20   ;;  %s1344_s19 = sphi %s1399_s19, %s1605_s19   ;;  %s1340_s18 = sphi %s1397_s18, %s1604_s18  }
   0x5   : > { %s30_s26 = sadd.s32 1, %s1356_s22  ;;  %s162_s27 = sadd.s32 1, %s1348_s20 }
   0x6   : > { %p32_p0 = scmp.ge.s32.totalorder %s30_s26, 2  ;;  %p172_p1 = scmp.ne.s32.totalorder %s1348_s20, %s1344_s19 }
   0x7   : > { %p173_p2 = scmp.eq.s32.totalorder %s1085_s24, 1  ;;  %p178_p3 = scmp.ne.s32.totalorder %s1344_s19, %s1340_s18 }
   0x8   : > { %s1610_s26 = smov (%p32_p0, %s30_s26), 0  ;;  %p179_p5 = scmp.eq.s32.totalorder %s1086_s25, 1 }
   0x9   : > { %p1437_p4 = por %p173_p2, %p172_p1  ;;  %s159_s29 = ssub.s32 %s1356_s22, %s1610_s26 }
   0xa   : > { %p1091_p6 = scmp.ge.s32.totalorder %s1360_s23, 1  ;;  %p160_p7 = scmp.eq.s32.totalorder %s159_s29, 0 }
   0xb   : > { %p1444_p8 = por %p179_p5, %p178_p3  ;;  %p234_p9 = scmp.lt.s32.totalorder %s1360_s23, 3 }
   0xc   : > { %s1450_s6 = scalar_select %p160_p7, %s1348_s20, %s162_s27  }
   0xd   : > { %p235_p10 = pnand %p1091_p6, %p234_p9 }
   0xe   : > { %v308_v0 = vld [vmem:[%s1597_s1] sm:$0xff] (!%p235_p10)  ;;  %v309_v1 = vld [vmem:[%s1597_s1 + $0x8] sm:$0xff] (!%p235_p10)  ;;  %v310_v2 = vld [vmem:[%s1597_s1 + $0x10] sm:$0xff] (!%p235_p10)  ;;  %v1362_v3 = vmov (!%p235_p10), 0.0|0.0   ;;  %vm1363_vm0 = vmmov (!%p235_p10), 0   ;;  %v1364_v6 = vmov (!%p235_p10), 0.0  }
   0xf   : > { %238 = sbr.rel (%p235_p10) target bundleno = 1657 (0x679), region = 40  ;;  %1196 = vmatprep.subr.bf16.mxu0 (!%p235_p10), %v1362_v3  ;;  %v1197_v4 = vpack.c.bf16 (!%p235_p10), %v309_v1, %v308_v0  ;;  %v311_v5 = vld [vmem:[%s1597_s1 + $0x18] sm:$0xff] (!%p235_p10)  ;;  %1148 = vmatprep.mubr.msk.f32.mxu0 (!%p235_p10), %vm1363_vm0, %v1364_v6  ;;  %p277_p11 = scmp.lt.s32.totalorder (!%p235_p10), %s1352_s21, 1  ;;  %vm303_vm1 = vcmask (!%p235_p10), 261120   ;;  %vm387_vm2 = vcmask (!%p235_p10), 130048   ;;  %v1365_v12 = vmov (!%p235_p10), 0  }
  0x10   : > { %304 = vst.msk [vmem:[#allocation2] sm:$0xff] (!%p235_p10), %vm303_vm1, %v1364_v6  ;;  %1151 = vmatprep.subr.mxu1 (!%p235_p10), %v1364_v6  ;;  %1153 = vmatprep.mubr.msk.f32.mxu1 (!%p235_p10), %vm1363_vm0, %v1364_v6  ;;  %v1200_v7 = vpack.c.bf16 (!%p235_p10), %v311_v5, %v310_v2  ;;  %vm464_vm3 = vcmask (!%p235_p10), 64512   ;;  %v1100_v23 = vld [vmem:[%s1597_s1 + $0x20] sm:$0xff] (!%p235_p10)  ;;  %v1101_v24 = vld [vmem:[%s1597_s1 + $0x28] sm:$0xff] (!%p235_p10)  ;;  %v1102_v26 = vld [vmem:[%s1597_s1 + $0x30] sm:$0xff] (!%p235_p10)  ;;  %s274_s9 = sand.u32 (!%p235_p10), 1, %s1344_s19  }
  0x11   : > { %1198 = vmatpush3.bf16.msra.mxu0 (!%p235_p10), %v1197_v4  ;;  %1273 = vset.pattern.permute.xlu0 (!%p235_p10), %v1365_v12  ;;  %v1206_v25 = vpack.c.bf16 (!%p235_p10), %v1101_v24, %v1100_v23  ;;  %v1103_v27 = vld [vmem:[%s1597_s1 + $0x38] sm:$0xff] (!%p235_p10)  ;;  %v556_v31 = vld [vmem:[%s1599_s3] sm:$0xff] (!%p235_p10)  ;;  %v557_v32 = vld [vmem:[%s1599_s3 + $0x8] sm:$0xff] (!%p235_p10)  ;;  %s1092_s10 = sshll.u32 (!%p235_p10), %s274_s9, 3  ;;  %s1113_s13 = sshll.u32 (!%p235_p10), %s1352_s21, 7 }
  0x12   : > { %1199 = vmatprep.subr.bf16.mxu0 (!%p235_p10), %v1362_v3  ;;  %v1209_v30 = vpack.c.bf16 (!%p235_p10), %v1103_v27, %v1102_v26  ;;  %v1203_v33 = vpack.c.bf16 (!%p235_p10), %v557_v32, %v556_v31  ;;  %v1108_v55 = vld [vmem:[%s1599_s3 + $0x10] sm:$0xff] (!%p235_p10)  ;;  %v1109_v56 = vld [vmem:[%s1599_s3 + $0x18] sm:$0xff] (!%p235_p10)  ;;  %s276_s14 = scalar_lea.vmem (!%p235_p10), [#allocation3], %s1092_s10  ;;  %s1548_s24 = scalar_lea.hbm (!%p235_p10), %s1601_s5, %s1113_s13 }
  0x13   : > { %v1212_v57 = vpack.c.bf16 (!%p235_p10), %v1109_v56, %v1108_v55 }
  0x15   : > { %1201 = vmatpush3.bf16.msra.mxu0 (!%p235_p10), %v1200_v7 }
  0x16   : > { %s278_s15 = scalar_select %p277_p11, %s1352_s21, 1  ;;  %1202 = vmatprep.subr.bf16.mxu0 %v1362_v3 }
  0x17   : > { %v555_v43 = vld [vmem:[#allocation2] sm:$0xff]  ;;  %s1366_s21 = smov [#allocation3]  }
  0x18   : > { %s1093_s16 = sshll.u32 %s278_s15, 3  ;;  %s976_s15 = sshll.u32 %s276_s14, 4  ;;  %s1550_s15 = int_to_ptr.vmem [resolvable:$true] %s976_s15 }
  0x19   : > { %s280_s25 = scalar_lea.vmem %s1596_s0, %s1093_s16  ;;  %s291_s7 = scalar_lea.vmem %s1598_s2, %s1093_s16 }
  0x1a   : > { %v305_v8 = vld [vmem:[%s280_s25] sm:$0xff]  ;;  %s963_s25 = scalar_lea.sflag [#allocation4], %s274_s9  ;;  %s1282_s27 = scalar_lea.vmem %s1550_s15, 128 }
  0x1b   : > { %1149 = vmatmul.mubr.msk.f32.vlgmr.msra.gmra.mrb[0].mxu0 %vm303_vm1, %v305_v8  ;;  %v306_v16 = vld [vmem:[%s291_s7] sm:$0xff]  ;;  %p1283_p12 = scmp.ne.s32.totalorder %s1550_s15, %s1282_s27  ;;  %s1286_s29 = sshll.u32 %s1366_s21, 4  ;;  %s1287_s29 = int_to_ptr.vmem [resolvable:$false] %s1286_s29 }
  0x1c   : > { %1165 = vmatprep.mubr.msk.f32.mxu0 %vm1363_vm0, %v1364_v6  ;;  %v307_v17 = vsub.f32 1.0, %v306_v16  ;;  %1204 = vmatpush3.bf16.msra.mxu0 %v1203_v33  ;;  %s1288_s7 = scalar_lea.vmem %s1287_s29, 256  ;;  %p1289_p1 = scmp.lt.s32.totalorder %s1550_s15, %s1287_s29 }
  0x1d   : > { %1179 = vmatprep.subr.mxu0 %v1364_v6  ;;  %p1284_p13 = pnand %p1283_p12, %p1437_p4  ;;  %p1290_p2 = scmp.lt.s32.totalorder %s1288_s7, %s1282_s27 }
  0x1f   : > { %p1285_p0 = pneg %p1284_p13  ;;  %p1291_p3 = por %p1290_p2, %p1289_p1 }
  0x21   : > { %p1292_p5 = pnand %p1291_p3, %p1285_p0 }
  0xee   : > { %v382_v9 = vpop.f32.mrb[0].mxu0 }
  0xef   : > { %v386_v10 = vmul.f32 0.25, %v382_v9  ;;  %v1150_v11 = vpop.f32.mrb[1].mxu0  ;;  %1152 = vmatpush3.xpose.msk.msra.mxu1 %vm387_vm2, %v382_v9 }
  0xf0   : > { %1156 = vmatprep.subr.mxu1 %v1364_v6 }
  0xf2   : > { %1154 = vmatmul.mubr.msk.f32.vlgmr.msra.gmra.mrb[0].mxu1 %vm387_vm2, %v386_v10 }
  0xf3   : > { %1158 = vmatprep.mubr.msk.f32.mxu1 %vm1363_vm0, %v1364_v6 }
 0x1c5   : > { %v460_v13 = vpop.f32.mrb[0].mxu1 }
 0x1c6   : > { %v1155_v14 = vpop.f32.mrb[1].mxu1  ;;  %v465_v15 = vsel %vm464_vm3, %v460_v13, -inf }
 0x1c7   : > { %466 = vmax.xlane.f32.xlu0 %v465_v15 }
 0x1dd   : > { %476 = vperm.xlu0 %1273, %v307_v17  }
 0x254   : > { %v467_v18 = vpop.xlane.xlu0 %466 }
 0x255   : > { %v468_v19 = vsub.f32 %v460_v13, %v467_v18 }
 0x257   : > { %v469_v20 = vmul.f32 1.442695, %v468_v19 }
 0x259   : > { %1274 = vpow2.f32 %v469_v20 }
 0x25c   : > { %v477_v21 = vpop.permute.xlu0 %476 }
 0x25d   : > { %v479_v22 = vmul.f32 %v477_v21, %v382_v9 }
 0x25f   : > { %1157 = vmatpush3.msra.mxu1 %v479_v22 }
 0x260   : > { %1205 = vmatprep.subr.bf16.mxu1 %v1362_v3 }
 0x263   : > { %v1275_v28 = vpop.eup %1274 }
 0x264   : > { %1159 = vmatmul.mubr.msk.f32.vlgmr.msra.gmra.mrb[2].mxu1 %vm464_vm3, %v1275_v28  ;;  %v471_v29 = vsel %vm464_vm3, %v1275_v28, 0.0 }
 0x265   : > { %1207 = vmatpush3.bf16.msra.mxu1 %v1206_v25  ;;  %472 = vadd.xlane.f32.xlu1 %v471_v29 }
 0x266   : > { %1208 = vmatprep.subr.bf16.mxu1 %v1362_v3  ;;  %1176 = vmatprep.mubr.msk.f32.mxu1 %vm1363_vm0, %v1364_v6 }
 0x269   : > { %1210 = vmatpush3.bf16.msra.mxu1 %v1209_v30 }
 0x26a   : > { %1211 = vmatprep.subr.bf16.mxu1 %v1362_v3  ;;  %v1111_v3 = vld [vmem:[%s1600_s4] ss:$0 sm:$0xff] }
 0x26c   : > { %1177 = vmatmul.mubr.msk.f32.vlgmr.msra.gmra.mrb[4].mxu1 %vm303_vm1, %v305_v8 }
 0x26d   : > { %1193 = vmatprep.mubr.msk.f32.mxu1 %vm1363_vm0, %v1364_v6  ;;  %1213 = vmatpush3.bf16.msra.mxu1 %v1212_v57 }
 0x2f2   : > { %v473_v34 = vpop.xlane.xlu1 %472 }
 0x2f3   : > { %1276 = vrcp.f32 %v473_v34 }
 0x2fd   : > { %v1277_v35 = vpop.eup %1276 }
 0x337   : > { %v549_v36 = vpop.f32.mrb[2].mxu1 }
 0x338   : > { %v554_v37 = vmul.f32 %v1277_v35, %v549_v36  ;;  %v1160_v38 = vpop.f32.mrb[3].mxu1 }
 0x33a   : > { %1166 = vmatmul.mubr.msk.f32.vlgmr.msra.gmra.mrb[2].mxu0 %vm387_vm2, %v554_v37 }
 0x33b   : > { %1181 = vmatprep.mubr.msk.f32.mxu0 %vm1363_vm0, %v1364_v6 }
 0x33f   : > { %v704_v39 = vpop.f32.mrb[4].mxu1 }
 0x340   : > { %v708_v40 = vmul.f32 0.25, %v704_v39  ;;  %v1178_v41 = vpop.f32.mrb[5].mxu1  ;;  %1180 = vmatpush3.xpose.msk.msra.mxu0 %vm387_vm2, %v704_v39  ;;  %v794_v42 = vmul.f32 %v704_v39, %v477_v21 }
 0x341   : > { %1184 = vmatprep.subr.mxu0 %v1364_v6 }
 0x343   : > { %1182 = vmatmul.mubr.msk.f32.vlgmr.msra.gmra.mrb[4].mxu0 %vm387_vm2, %v708_v40 }
 0x344   : > { %1185 = vmatpush3.msra.mxu0 %v794_v42  ;;  %1186 = vmatprep.mubr.msk.f32.mxu0 %vm1363_vm0, %v1364_v6 }
 0x40d   : > { %v627_v44 = vpop.f32.mrb[2].mxu0 }
 0x40e   : > { %v631_v45 = vadd.f32 %v627_v44, %v555_v43  ;;  %v1167_v46 = vpop.f32.mrb[3].mxu0 }
 0x410   : > { %632 = vst.msk [vmem:[#allocation2] sm:$0xff] %vm303_vm1, %v631_v45 }
 0x416   : > { %v781_v47 = vpop.f32.mrb[4].mxu0 }
 0x417   : > { %v1183_v48 = vpop.f32.mrb[5].mxu0  ;;  %v785_v49 = vsel %vm464_vm3, %v781_v47, -inf  ;;  %v870_v63 = vld [vmem:[#allocation2] sm:$0xff] }
 0x418   : > { %786 = vmax.xlane.f32.xlu1 %v785_v49 }
 0x4a5   : > { %v787_v50 = vpop.xlane.xlu1 %786 }
 0x4a6   : > { %v788_v51 = vsub.f32 %v781_v47, %v787_v50 }
 0x4a8   : > { %v789_v52 = vmul.f32 1.442695, %v788_v51 }
 0x4aa   : > { %1278 = vpow2.f32 %v789_v52 }
 0x4b4   : > { %v1279_v53 = vpop.eup %1278 }
 0x4b5   : > { %1187 = vmatmul.mubr.msk.f32.vlgmr.msra.gmra.mrb[6].mxu0 %vm464_vm3, %v1279_v53  ;;  %v791_v54 = vsel %vm464_vm3, %v1279_v53, 0.0 }
 0x4b6   : > { %792 = vadd.xlane.f32.xlu1 %v791_v54 }
 0x543   : > { %v793_v58 = vpop.xlane.xlu1 %792 }
 0x544   : > { %1280 = vrcp.f32 %v793_v58 }
 0x54e   : > { %v1281_v59 = vpop.eup %1280 }
 0x588   : > { %v864_v60 = vpop.f32.mrb[6].mxu0 }
 0x589   : > { %v869_v61 = vmul.f32 %v1281_v59, %v864_v60  ;;  %v1188_v62 = vpop.f32.mrb[7].mxu0 }
 0x58b   : > { %1194 = vmatmul.mubr.msk.f32.vlgmr.msra.gmra.mrb[6].mxu1 %vm387_vm2, %v869_v61 }
 0x65e   : > { %v943_v0 = vpop.f32.mrb[6].mxu1 }
 0x65f   : > { %v947_v1 = vadd.f32 %v943_v0, %v870_v63  ;;  %v1195_v2 = vpop.f32.mrb[7].mxu1 }
 0x661   : > { %948 = vst.msk [vmem:[#allocation2] sm:$0xff] %vm303_vm1, %v947_v1 }
 0x668   : > { %v952_v4 = vld [vmem:[#allocation2] sm:$0xff] }
 0x669   : > { %v960_v5 = vadd.f32 %v1111_v3, %v952_v4 }
 0x66b   : > { %961 = vst.msk [vmem:[%s276_s14] sm:$0xff] %vm303_vm1, %v960_v5 }
 0x66c   : > { %1295 = shalt.err (!%p1292_p5)
}
 0x66d   : > { %s1296_s8 = scalar_lea.hbm %s1548_s24, 128  ;;  %s1300_s11 = scalar_lea.hbm %s1601_s5, 256 }
 0x66e   : > { %p1297_p6 = scmp.ne.s32.totalorder %s1548_s24, %s1296_s8  ;;  %p1301_p10 = scmp.lt.u32.totalorder %s1548_s24, %s1601_s5 }
 0x66f   : > { %p1302_p11 = scmp.lt.u32.totalorder %s1300_s11, %s1296_s8  ;;  %p1304_p13 = scmp.lt.u32.totalorder %s1296_s8, %s1548_s24 }
 0x670   : > { %p1298_p7 = pnand %p1297_p6, %p1437_p4 }
 0x671   : > { %p1303_p12 = por %p1302_p11, %p1301_p10 }
 0x672   : > { %p1299_p9 = pneg %p1298_p7 }
 0x673   : > { %p1305_p0 = por %p1304_p13, %p1303_p12 }
 0x675   : > { %p1306_p1 = pnand %p1305_p0, %p1299_p9 }
 0x677   : > { %1309 = shalt.err (!%p1306_p1)
}
 0x678   : > { %1214 = dma.vmem_to_hbm [thread:$0]  (%p1437_p4), %s1550_s15, 128, %s1548_s24, %s963_s25  }
 0x679 PF: > { %p1220_p2 = scmp.ge.s32.totalorder %s1360_s23, 2  ;;  %s988_s14 = sand.u32 1, %s1340_s18  }
 0x67a   : > { %s989_s16 = scalar_lea.sflag [#allocation4], %s988_s14 }
 0x67b   : > { %p1217_p3 = pnand %p1220_p2, %p1444_p8 }
 0x67d   : > { %1335 = dma.done.wait (!%p1217_p3), %s989_s16, 128  }
 0x67e   : > { %1337 = vsyncadd (!%p1217_p3), %s989_s16, 4294967168  ;;  %s18_s23 = sadd.s32 1, %s1360_s23   ;;  %s1604_s18 = smov %s1344_s19 }
 0x67f   : > { %p15_p5 = scmp.ge.s32.totalorder %s18_s23, 4   ;;  %s1605_s19 = smov %s1348_s20 }
 0x680   : > { %s1606_s20 = smov %s1450_s6  ;;  %s1607_s21 = smov %s1356_s22 }
 0x681   : > { %s1608_s22 = smov %s1610_s26  ;;  %17 = sbr.rel (!%p15_p5) target bundleno = 4 (0x4), region = 94 }
 0x688   :  { %994 = vsyncpa [#allocation4], 1 }
 0x689   :  { %996 = vsyncpa [#allocation4 + $0x1], 1 }

</bundles_post_ra>
